<compile_context>
chip_gen: v7x
topology: tpu7x:2x2x1
jax: 0.10.0
libtpu: 0.0.40
codegen_flags: <defaults>
</compile_context>

<pallas_src>
import math
import numpy as np
import jax
import jax.numpy as jnp
from jax.experimental import pallas as pl
from jax.experimental.pallas import tpu as pltpu


def _adaptive_pool_weights_np(n_in, n_out):
    """Row-stochastic matrix W (n_out, n_in) s.t. W @ v == AdaptiveAvgPool1d(n_out)(v),
    matching PyTorch bin boundaries: start=floor(i*N/S), end=ceil((i+1)*N/S)."""
    w = np.zeros((n_out, n_in), dtype=np.float32)
    for i in range(n_out):
        s = (i * n_in) // n_out
        e = -((-(i + 1) * n_in) // n_out)  # ceil
        w[i, s:e] = 1.0 / float(e - s)
    return w


def _combined_pool_weight_np(T, V, local_size):
    """(T*V, local_size*local_size + 1) weight:
       columns [0, 25)  : flattened (5,5) AdaptiveAvgPool2d(5) of the (T, V) grid
       column  25       : AdaptiveAvgPool2d(1) of that (5,5) pool (unweighted mean)."""
    wt = _adaptive_pool_weights_np(T, local_size)            # (5, T)
    wv = _adaptive_pool_weights_np(V, local_size)            # (5, V)
    # W_local[t*V+v, p*5+q] = wt[p,t] * wv[q,v]
    w_local = np.einsum("pt,qv->tvpq", wt, wv).reshape(T * V, local_size * local_size)
    w_glob = w_local.mean(axis=1, keepdims=True)             # global = mean of 25 locals
    return np.concatenate([w_local, w_glob], axis=1).astype(np.float32)  # (T*V, 26)


def _round_up(n, m):
    return -(-n // m) * m


def _lane_pad(n):
    return _round_up(n, 128)


def _sub_pad(n):
    return _round_up(n, 8)


def _pick_bc_tile(BC, max_tile=8192):
    """Large row tiles for HBM-roofline DMAs; >=2 grid steps when possible so the
    single 'parallel' grid axis can shard across both TensorCores on v7x."""
    if BC <= 16:
        return BC  # single full-extent block (no (8,) divisibility requirement)
    tile = min(max_tile, -(-BC // 2))   # at least 2 grid steps when BC <= 2*max_tile
    return _round_up(tile, 8)


def mlca_pool_kernel(x_ref, w_ref, out_ref):
    # x_ref: (bc_tile, T*V), w_ref: (T*V, 26), out_ref: (bc_tile, 26)
    # No LHS upcast: MXU takes x.dtype operands with f32 accumulation.
    out_ref[...] = jnp.dot(
        x_ref[...], w_ref[...], preferred_element_type=jnp.float32
    ).astype(out_ref.dtype)


def mlca_forward(x, local_size=5, V=17, bc_tile=None):
    """x: (b, c, T*V).  Returns (x4, local_arv, global_arv).
    PyTorch forward returns only x4 (a view); the pooled tensors are computed
    (in-kernel, batched) and discarded by the reference module."""
    b, c, t_v = x.shape
    assert t_v % V == 0, f"last dim ({t_v}) must be divisible by V={V}"
    T = t_v // V

    # The module's return value: pure metadata reshape, no kernel copy needed.
    x4 = x.reshape(b, c, T, V)

    BC = b * c
    TV = t_v
    n_out = local_size * local_size + 1                      # 25 local bins + 1 global

    if bc_tile is None:
        bc_tile = _pick_bc_tile(BC)
    bc_tile = min(bc_tile, BC)

    # Flatten (b, c) -> one big row axis; pure reshape, no copy, no padding.
    x_flat = x.reshape(BC, TV)

    # Combined pooling weight, kept in the input dtype (f32 accumulation on MXU).
    w_comb = jnp.asarray(_combined_pool_weight_np(T, V, local_size), dtype=x.dtype)

    grid = (pl.cdiv(BC, bc_tile),)

    # Explicit VMEM budget from the actual (lane/sublane-padded) tile footprint,
    # double-buffered, plus headroom.  Stays well under v7x's 64 MiB per-TC VMEM.
    itemsize = jnp.dtype(x.dtype).itemsize
    in_bytes = _sub_pad(bc_tile) * _lane_pad(TV) * itemsize
    out_bytes = _sub_pad(bc_tile) * _lane_pad(n_out) * itemsize
    w_bytes = _sub_pad(TV) * _lane_pad(n_out) * itemsize
    vmem_limit = 2 * (in_bytes + out_bytes + w_bytes) + (4 << 20)
    vmem_limit = int(min(max(vmem_limit, 16 << 20), 48 << 20))

    pooled = pl.pallas_call(
        mlca_pool_kernel,
        out_shape=jax.ShapeDtypeStruct((BC, n_out), x.dtype),
        grid_spec=pltpu.PrefetchScalarGridSpec(
            num_scalar_prefetch=0,
            grid=grid,
            in_specs=[
                pl.BlockSpec((bc_tile, TV), lambda i: (i, 0)),
                pl.BlockSpec((TV, n_out), lambda i: (0, 0)),
            ],
            out_specs=pl.BlockSpec((bc_tile, n_out), lambda i: (i, 0)),
        ),
        compiler_params=pltpu.CompilerParams(
            dimension_semantics=("parallel",),
            vmem_limit_bytes=vmem_limit),
    )(x_flat, w_comb)

    local_arv = pooled[:, : local_size * local_size].reshape(b, c, local_size, local_size)
    global_arv = pooled[:, local_size * local_size:].reshape(b, c, 1, 1)
    return x4, local_arv, global_arv


if __name__ == "__main__":
    key = jax.random.PRNGKey(0)
    b, c, T, V = 2, 4, 8, 17          # small shapes; t_v = T*V = 136

    # --- deterministic parameter init (matches MLCA.__init__ shapes) ---
    in_size, gamma, b_param = c, 2, 1
    t = int(abs(math.log(in_size, 2) + b_param) / gamma)
    k = t if t % 2 else t + 1
    kx, kw1, kw2 = jax.random.split(key, 3)
    conv_w = jax.random.normal(kw1, (1, 1, k), jnp.float32)        # nn.Conv1d(1,1,k), unused in forward
    conv_local_w = jax.random.normal(kw2, (1, 1, k), jnp.float32)  # nn.Conv1d(1,1,k), unused in forward
    # TODO(synk): conv / conv_local are never applied in the reference forward(); kept only for shape parity.

    x = jax.random.normal(kx, (b, c, T * V), jnp.float32)

    out, local_arv, global_arv = mlca_forward(x)
    jax.block_until_ready((out, local_arv, global_arv))

    # --- correctness checks against plain-numpy reference ---
    xr = np.asarray(x).reshape(b, c, T, V)
    assert np.allclose(np.asarray(out), xr), "passthrough (returned x) mismatch"

    wt = _adaptive_pool_weights_np(T, 5)
    wv = _adaptive_pool_weights_np(V, 5)
    ref_local = np.einsum("pt,bctv,qv->bcpq", wt, xr, wv)
    ref_global = ref_local.mean(axis=(-2, -1), keepdims=True)
    assert np.allclose(np.asarray(local_arv), ref_local, atol=1e-5), "local pool mismatch"
    assert np.allclose(np.asarray(global_arv), ref_global, atol=1e-5), "global pool mismatch"

    print("KERNEL_OK")
</pallas_src>

<mosaic_0001>
module attributes {stable_mosaic.version = 11 : i64} {
  func.func @mlca_pool_kernel(%arg0: i32, %arg1: memref<8x136xf32, #tpu.memory_space<vmem>>, %arg2: memref<136x26xf32, #tpu.memory_space<vmem>>, %arg3: memref<8x26xf32, #tpu.memory_space<vmem>>) attributes {dimension_semantics = [#tpu.dimension_semantics<parallel>], iteration_bounds = array<i64: 1>, scalar_prefetch = 0 : i64, scratch_operands = 0 : i64, tpu.core_type = #tpu.core_type<tc>, window_params = [{transform_indices = @transform_0, window_bounds = array<i64: 8, 136>}, {pipeline_mode = #tpu.pipeline_mode<synchronous>, transform_indices = @transform_1, window_bounds = array<i64: 136, 26>}, {transform_indices = @transform_2, window_bounds = array<i64: 8, 26>}]} {
    %c0 = arith.constant 0 : index
    %c0_0 = arith.constant 0 : index
    %0 = vector.load %arg1[%c0, %c0_0] : memref<8x136xf32, #tpu.memory_space<vmem>>, vector<8x136xf32>
    %c0_1 = arith.constant 0 : index
    %c0_2 = arith.constant 0 : index
    %1 = vector.load %arg2[%c0_1, %c0_2] : memref<136x26xf32, #tpu.memory_space<vmem>>, vector<136x26xf32>
    %cst = arith.constant dense<0.000000e+00> : vector<8x26xf32>
    %2 = tpu.matmul %0, %1, %cst {dimension_numbers = #tpu.dot_dimension_numbers<[1], [0], [0], [1], [0, 0, 1, 1], [], []>} : vector<8x136xf32>, vector<136x26xf32>, vector<8x26xf32> -> vector<8x26xf32>
    %c0_3 = arith.constant 0 : index
    %c0_4 = arith.constant 0 : index
    %3 = vector.load %arg3[%c0_3, %c0_4] : memref<8x26xf32, #tpu.memory_space<vmem>>, vector<8x26xf32>
    tpu.vector_store %arg3[%c0_3, %c0_4], %2 {strides = array<i32>} : memref<8x26xf32, #tpu.memory_space<vmem>>, vector<8x26xf32>,
    return
  }
  func.func @transform_0(%arg0: i32) -> (i32, i32) {
    %c0_i32 = arith.constant 0 : i32
    %c0_i32_0 = arith.constant 0 : i32
    return %arg0, %c0_i32 : i32, i32
  }
  func.func @transform_1(%arg0: i32) -> (i32, i32) {
    %c0_i32 = arith.constant 0 : i32
    %c0_i32_0 = arith.constant 0 : i32
    %c0_i32_1 = arith.constant 0 : i32
    return %c0_i32, %c0_i32_0 : i32, i32
  }
  func.func @transform_2(%arg0: i32) -> (i32, i32) {
    %c0_i32 = arith.constant 0 : i32
    %c0_i32_0 = arith.constant 0 : i32
    return %arg0, %c0_i32 : i32, i32
  }
}

</mosaic_0001>

<bundles_post_ra>
// kernel: tpu_custom_call.1
= control target key start
LH: loop header
LB: loop body
LE: loop exit
PB: predicated region body
PF: predicated region fallthrough
CT: control target
= control target key end

     0   :  { %v173_v3 = vmov 0.0|0.0   ;;  %vm31_vm0 = vcmask 64512   ;;  %s260_s0 = inlined_call_operand.vmem [shape: f32[8,136], index: 0, kind: input, shape index: {}]   ;;  %s261_s1 = inlined_call_operand.vmem [shape: f32[136,26], index: 1, kind: input, shape index: {}]   ;;  %s262_s2 = inlined_call_operand.hbm [shape: f32[8,26], index: 2, kind: output, shape index: {}]  }
   0x1   :  { %v14_v0 = vld [vmem:[%s261_s1] sm:$0xff]  ;;  %v15_v1 = vld [vmem:[%s261_s1 + $0x8] sm:$0xff]  ;;  %v16_v2 = vld [vmem:[%s261_s1 + $0x10] sm:$0xff]  ;;  %122 = vmatprep.subr.bf16.mxu0 %v173_v3 }
   0x2   :  { %v123_v4 = vpack.c.bf16 %v15_v1, %v14_v0  ;;  %v17_v5 = vld [vmem:[%s261_s1 + $0x18] sm:$0xff]  ;;  %v18_v7 = vld [vmem:[%s261_s1 + $0x20] sm:$0xff]  ;;  %v19_v8 = vld [vmem:[%s261_s1 + $0x28] sm:$0xff] }
   0x3   :  { %v126_v6 = vpack.c.bf16 %v17_v5, %v16_v2  ;;  %v13_v9 = vld [vmem:[%s260_s0 + $0x8] sm:$0xff] }
   0x4   :  { %124 = vmatpush1.bf16.msra.mxu0 %v123_v4  ;;  %121 = vmatprep.mubr.msk.f32.mxu0 %vm31_vm0, %v13_v9 }
   0x5   :  { %125 = vmatprep.subr.bf16.mxu0 %v173_v3 }
   0x6   :  { %7 = vsyncpa [#allocation3], 0  ;;  %v129_v10 = vpack.c.bf16 %v19_v8, %v18_v7  ;;  %v20_v11 = vld [vmem:[%s261_s1 + $0x30] sm:$0xff]  ;;  %v21_v12 = vld [vmem:[%s261_s1 + $0x38] sm:$0xff]  ;;  %v174_v26 = vmov 0.0   ;;  %s175_s19 = smov [#allocation2]  }
   0x7   :  { %v132_v13 = vpack.c.bf16 %v21_v12, %v20_v11  ;;  %v22_v14 = vld [vmem:[%s261_s1 + $0x40] sm:$0xff]  ;;  %v23_v15 = vld [vmem:[%s261_s1 + $0x48] sm:$0xff]  ;;  %v24_v17 = vld [vmem:[%s261_s1 + $0x50] sm:$0xff]  ;;  %s113_s20 = sshll.u32 %s175_s19, 4  ;;  %vm105_vm1 = vcmask 211968   ;;  %s114_s20 = int_to_ptr.vmem [resolvable:$true] %s113_s20 }
   0x8   :  { %127 = vmatpush1.bf16.msra.mxu0 %v126_v6  ;;  %v135_v16 = vpack.c.bf16 %v23_v15, %v22_v14  ;;  %v25_v18 = vld [vmem:[%s261_s1 + $0x58] sm:$0xff]  ;;  %v26_v20 = vld [vmem:[%s261_s1 + $0x60] sm:$0xff]  ;;  %v27_v21 = vld [vmem:[%s261_s1 + $0x68] sm:$0xff]  ;;  %s149_s21 = scalar_lea.vmem %s114_s20, 128  ;;  %p154_p1 = scmp.lt.s32.totalorder %s114_s20, %s114_s20 }
   0x9   :  { %128 = vmatprep.subr.bf16.mxu0 %v173_v3  ;;  %v138_v19 = vpack.c.bf16 %v25_v18, %v24_v17  ;;  %v141_v22 = vpack.c.bf16 %v27_v21, %v26_v20  ;;  %v28_v23 = vld [vmem:[%s261_s1 + $0x70] sm:$0xff]  ;;  %v29_v24 = vld [vmem:[%s261_s1 + $0x78] sm:$0xff]  ;;  %v30_v27 = vld [vmem:[%s261_s1 + $0x80] sm:$0xff]  ;;  %p150_p0 = scmp.ne.s32.totalorder %s114_s20, %s149_s21  ;;  %p155_p2 = scmp.lt.s32.totalorder %s149_s21, %s149_s21 }
   0xa   :  { %v144_v25 = vpack.c.bf16 %v29_v24, %v28_v23  ;;  %v12_v28 = vld [vmem:[%s260_s0] sm:$0xff] }
   0xb   :  { %p156_p3 = por %p155_p2, %p154_p1 }
   0xc   :  { %130 = vmatpush1.bf16.msra.mxu0 %v129_v10 }
   0xd   :  { %131 = vmatprep.subr.bf16.mxu0 %v173_v3  ;;  %p157_p4 = pnand %p156_p3, %p150_p0 }
  0x10   :  { %133 = vmatpush1.bf16.msra.mxu0 %v132_v13 }
  0x11   :  { %134 = vmatprep.subr.bf16.mxu0 %v173_v3 }
  0x14   :  { %136 = vmatpush1.bf16.msra.mxu0 %v135_v16 }
  0x15   :  { %137 = vmatprep.subr.bf16.mxu0 %v173_v3 }
  0x18   :  { %139 = vmatpush1.bf16.msra.mxu0 %v138_v19 }
  0x19   :  { %140 = vmatprep.subr.bf16.mxu0 %v173_v3 }
  0x1c   :  { %142 = vmatpush1.bf16.msra.mxu0 %v141_v22 }
  0x1d   :  { %143 = vmatprep.subr.bf16.mxu0 %v173_v3 }
  0x20   :  { %145 = vmatpush1.bf16.msra.mxu0 %v144_v25 }
  0x21   :  { %67 = vmatprep.subr.mxu0 %v174_v26 }
  0x24   :  { %68 = vmatpush1.msra.mxu0 %v30_v27 }
  0x25   :  { %100 = vmatmul.mubr.f32.vlgmr.msra.gmra.mrb[0].mxu0 %v12_v28 }
  0xf8   :  { %v101_v29 = vpop.f32.mrb[0].mxu0 }
  0xf9   :  { %106 = vst.msk [vmem:[#allocation2] sm:$0xff] %vm105_vm1, %v101_v29  ;;  %v103_v30 = vpop.f32.mrb[1].mxu0 }
  0xfa   :  { %160 = shalt.err (!%p157_p4)
}
  0xfb   :  { %s161_s0 = scalar_lea.hbm %s262_s2, 128 }
  0xfc   :  { %p162_p5 = scmp.ne.s32.totalorder %s262_s2, %s161_s0  ;;  %p165_p6 = scmp.lt.u32.totalorder %s161_s0, %s262_s2 }
  0xfe   :  { %p167_p7 = pnand %p165_p6, %p162_p5 }
 0x100   :  { %170 = shalt.err (!%p167_p7)
}
 0x101   :  { %116 = dma.vmem_to_hbm [thread:$0]  %s114_s20, 128, %s262_s2, [#allocation3]  }
 0x102   :  { %171 = dma.done.wait [#allocation3], 128  }
 0x103   :  { %172 = vsyncadd [#allocation3], 4294967168 }
 0x104   :  { %120 = vsyncpa [#allocation3], 1 }

</bundles_post_ra>
